<compile_context>
chip_gen: v7x
topology: tpu7x:2x2x1
jax: 0.10.0
libtpu: 0.0.40
codegen_flags: <defaults>
</compile_context>

<pallas_src>
import functools

import jax
import jax.numpy as jnp
import numpy as np
from jax.experimental import pallas as pl
from jax.experimental.pallas import tpu as pltpu


# ----------------------------------------------------------------------------
# Pallas kernel (per (batch, row-tile) grid step):
#   acc = Wc(2*OC, K) @ P(K, tm) + bc(2*OC, 1)        (one MXU pass, f32 acc)
#   num = acc[:OC]; den = softplus(acc[OC:]) + clamp(bias_A, 0.01, 1)
#   out = num * (1/den)
# ----------------------------------------------------------------------------
def _siconv_kernel(p_ref, wc_ref, bc_ref, ba_ref, o_ref):
    oc = o_ref.shape[1]

    # Single fused matmul for numerator + denominator rows (bf16 in, f32 acc).
    acc = jnp.dot(wc_ref[...], p_ref[0], preferred_element_type=jnp.float32)
    acc = acc + bc_ref[...]                       # (2*OC, tm) + (2*OC, 1)

    num = acc[:oc, :]
    den_lin = acc[oc:, :]

    # Softplus with PyTorch semantics (beta=1, threshold=20): linear above 20.
    sp = jnp.where(
        den_lin > 20.0,
        den_lin,
        jnp.log1p(jnp.exp(jnp.minimum(den_lin, 20.0))),
    )

    # Hardtanh(min=0.01, max=1) on bias_A, broadcast over the lane (col) dim.
    den = sp + jnp.clip(ba_ref[...], 0.01, 1.0)   # (OC, tm) + (OC, 1)

    # EUP reciprocal instead of a VALU divide.
    o_ref[0] = num * pl.reciprocal(den, approx=True)


# ----------------------------------------------------------------------------
# Glue: im2col patch extraction, batched layout (N, K, OH*OW).
# K ordering = (c, kh, kw)  — matches weight.reshape(OC, C*KH*KW).
# ----------------------------------------------------------------------------
def _im2col(x, kh, kw, stride, padding, dilation):
    n, c, h, w = x.shape
    xp = jnp.pad(x, ((0, 0), (0, 0), (padding, padding), (padding, padding)))
    oh = (h + 2 * padding - dilation * (kh - 1) - 1) // stride + 1
    ow = (w + 2 * padding - dilation * (kw - 1) - 1) // stride + 1
    cols = []
    for i in range(kh):
        for j in range(kw):
            cols.append(
                xp[
                    :,
                    :,
                    i * dilation : i * dilation + stride * oh : stride,
                    j * dilation : j * dilation + stride * ow : stride,
                ]
            )
    patches = jnp.stack(cols, axis=2)                     # (N, C, KH*KW, OH, OW)
    patches = patches.reshape(n, c * kh * kw, oh * ow)    # K = c*KH*KW + i*KW + j
    return patches, oh, ow                                # (N, K, OH*OW)


# ----------------------------------------------------------------------------
# Wrapper: build the (single) patch matrix, launch the kernel, reshape to NCHW
# ----------------------------------------------------------------------------
@functools.partial(jax.jit, static_argnames=("num_ks", "den_ks", "stride", "padding", "dilation"))
def siconv2d_forward(x, w_num, b_num, w_den, b_den, bias_a,
                     *, num_ks, den_ks, stride=1, padding=0, dilation=1):
    n, c, _, _ = x.shape
    oc = w_num.shape[0]

    # bf16 before im2col: halves the bytes moved by every wrapper-side XLA op
    # (pad/stack/reshape) AND gives the kernel its bf16 MXU operand directly.
    x16 = x.astype(jnp.bfloat16)

    if num_ks == den_ks:
        # Shared patches: numerator and denominator convs read identical im2col
        # data -> stream it once, stack the weights along the OC axis.
        p, oh, ow = _im2col(x16, num_ks, num_ks, stride, padding, dilation)
        kt = c * num_ks * num_ks
        wc = jnp.concatenate(
            [w_num.reshape(oc, kt), w_den.reshape(oc, kt)], axis=0)       # (2*OC, K)
    else:
        # Fallback: different kernel sizes -> concatenate patch rows and use a
        # block-diagonal weight so the kernel stays a single fused GEMM.
        pn, oh, ow = _im2col(x16, num_ks, num_ks, stride, padding, dilation)
        pd, oh2, ow2 = _im2col(x16, den_ks, den_ks, stride, padding, dilation)
        assert (oh, ow) == (oh2, ow2), "num/den output spatial sizes must match"
        kn, kd = c * num_ks * num_ks, c * den_ks * den_ks
        kt = kn + kd
        p = jnp.concatenate([pn, pd], axis=1)                             # (N, K, OH*OW)
        wn2 = w_num.reshape(oc, kn)
        wd2 = w_den.reshape(oc, kd)
        wc = jnp.concatenate(
            [jnp.concatenate([wn2, jnp.zeros((oc, kd), wn2.dtype)], axis=1),
             jnp.concatenate([jnp.zeros((oc, kn), wd2.dtype), wd2], axis=1)],
            axis=0)                                                        # (2*OC, K)

    # Biases stay f32 (added to the f32 accumulator; f32 epilogue on all gens).
    bc = jnp.concatenate([b_num, b_den]).reshape(2 * oc, 1).astype(jnp.float32)
    ba = bias_a.reshape(oc, 1).astype(jnp.float32)

    ohw = oh * ow

    # Row tile: big tiles amortize per-step pipeline overhead; lane-dense
    # (multiple of 128).  Keep >= 2 total grid steps so v7x's two TensorCores
    # both get work via the "parallel" axes.
    tm = min(512, max(128, pl.cdiv(ohw, 128) * 128))
    while tm > 128 and n * pl.cdiv(ohw, tm) < 2:
        tm //= 2
    ohw_pad = pl.cdiv(ohw, tm) * tm

    wc16 = wc.astype(jnp.bfloat16)
    p16 = p.astype(jnp.bfloat16)
    if ohw_pad != ohw:
        p16 = jnp.pad(p16, ((0, 0), (0, 0), (0, ohw_pad - ohw)))

    grid = (n, ohw_pad // tm)
    # NOTE: per-block VMEM is tiny (tens of KiB double-buffered), well under
    # the default scoped VMEM on v5e/v6e/v7x, so no vmem_limit_bytes override.
    out3d = pl.pallas_call(
        _siconv_kernel,
        out_shape=jax.ShapeDtypeStruct((n, oc, ohw_pad), jnp.float32),
        grid=grid,
        in_specs=[
            pl.BlockSpec((1, kt, tm), lambda i, t: (i, 0, t)),   # patches (N, K, M) — streamed once
            pl.BlockSpec((2 * oc, kt), lambda i, t: (0, 0)),     # stacked weights (2*OC, K)
            pl.BlockSpec((2 * oc, 1), lambda i, t: (0, 0)),      # stacked conv biases
            pl.BlockSpec((oc, 1), lambda i, t: (0, 0)),          # bias_A
        ],
        out_specs=pl.BlockSpec((1, oc, tm), lambda i, t: (i, 0, t)),  # lane-dense output
        compiler_params=pltpu.CompilerParams(
            dimension_semantics=("parallel", "parallel")),
    )(p16, wc16, bc, ba)

    # (N, OC, OH*OW_pad) -> (N, OC, OH, OW): pure slice + reshape, no transpose.
    return out3d[:, :, :ohw].reshape(n, oc, oh, ow)


# ----------------------------------------------------------------------------
# Deterministic parameter init (mirrors SIConv2d.reset_parameters, synthetic)
# ----------------------------------------------------------------------------
def init_params(key, in_ch, out_ch, num_ks, den_ks, groups=1):
    k_wn, k_bn, k_bd, k_ba = jax.random.split(key, 4)

    # xavier_uniform_ for num_fcn.weight
    fan_in = (in_ch // groups) * num_ks * num_ks
    fan_out = out_ch * num_ks * num_ks
    bound = float(np.sqrt(6.0 / (fan_in + fan_out)))
    w_num = jax.random.uniform(
        k_wn, (out_ch, in_ch // groups, num_ks, num_ks),
        minval=-bound, maxval=bound, dtype=jnp.float32)

    # normal_(mean=0.01, std=1) for both conv biases
    b_num = 0.01 + jax.random.normal(k_bn, (out_ch,), dtype=jnp.float32)
    b_den = 0.01 + jax.random.normal(k_bd, (out_ch,), dtype=jnp.float32)

    # uniform_(0.5, 1) for bias_A
    bias_a = jax.random.uniform(k_ba, (out_ch,), minval=0.5, maxval=1.0,
                                dtype=jnp.float32)

    # den_fcn.weight := normalized 2D Gaussian (sigma = Sz/6), replicated
    sz = den_ks
    sigma = sz / 6.0
    coords = np.arange(sz) - sz // 2
    g1 = np.exp(-(coords ** 2) / (2.0 * sigma ** 2))
    g2 = np.outer(g1, g1)
    g2 = g2 / g2.sum()
    w_den = np.broadcast_to(g2[None, None], (out_ch, in_ch // groups, sz, sz))
    w_den = jnp.asarray(np.ascontiguousarray(w_den), dtype=jnp.float32)

    return w_num, b_num, w_den, b_den, bias_a


# ----------------------------------------------------------------------------
# Pure-JAX f32 reference (for a correctness check of the Pallas path)
# ----------------------------------------------------------------------------
def _reference(x, w_num, b_num, w_den, b_den, bias_a, *, stride, padding, dilation):
    dn = jax.lax.conv_dimension_numbers(x.shape, w_num.shape, ("NCHW", "OIHW", "NCHW"))
    conv = lambda inp, w: jax.lax.conv_general_dilated(
        inp, w, (stride, stride), [(padding, padding), (padding, padding)],
        rhs_dilation=(dilation, dilation), dimension_numbers=dn)
    num = conv(x, w_num) + b_num[None, :, None, None]
    den_lin = conv(x, w_den) + b_den[None, :, None, None]
    sp = jnp.where(den_lin > 20.0, den_lin, jnp.log1p(jnp.exp(jnp.minimum(den_lin, 20.0))))
    return num / (sp + jnp.clip(bias_a, 0.01, 1.0)[None, :, None, None])


if __name__ == "__main__":
    # small shapes: batch=2, in_channels=4, out_channels=8, spatial=16x16
    N, C_IN, C_OUT, H, W = 2, 4, 8, 16, 16
    NUM_KS = DEN_KS = 3
    STRIDE, PADDING, DILATION = 1, 1, 1

    key = jax.random.PRNGKey(0)
    k_x, k_p = jax.random.split(key)
    x = jax.random.normal(k_x, (N, C_IN, H, W), dtype=jnp.float32)
    w_num, b_num, w_den, b_den, bias_a = init_params(k_p, C_IN, C_OUT, NUM_KS, DEN_KS)

    out = siconv2d_forward(
        x, w_num, b_num, w_den, b_den, bias_a,
        num_ks=NUM_KS, den_ks=DEN_KS,
        stride=STRIDE, padding=PADDING, dilation=DILATION)
    out = jax.block_until_ready(out)

    ref = _reference(x, w_num, b_num, w_den, b_den, bias_a,
                     stride=STRIDE, padding=PADDING, dilation=DILATION)
    # bf16 MXU operands + approx reciprocal -> looser tolerance than f32 path.
    np.testing.assert_allclose(np.asarray(out), np.asarray(ref), rtol=5e-2, atol=5e-2)

    print("KERNEL_OK")
</pallas_src>

<mosaic_0001>
module attributes {stable_mosaic.version = 11 : i64} {
  func.func @_siconv_kernel(%arg0: i32, %arg1: i32, %arg2: memref<1x36x256xbf16, #tpu.memory_space<vmem>>, %arg3: memref<16x36xbf16, #tpu.memory_space<vmem>>, %arg4: memref<16x1xf32, #tpu.memory_space<vmem>>, %arg5: memref<8x1xf32, #tpu.memory_space<vmem>>, %arg6: memref<1x8x256xf32, #tpu.memory_space<vmem>>) attributes {dimension_semantics = [#tpu.dimension_semantics<parallel>, #tpu.dimension_semantics<parallel>], iteration_bounds = array<i64: 2, 1>, scalar_prefetch = 0 : i64, scratch_operands = 0 : i64, tpu.core_type = #tpu.core_type<tc>, window_params = [{transform_indices = @transform_0, window_bounds = array<i64: 1, 36, 256>}, {pipeline_mode = #tpu.pipeline_mode<synchronous>, transform_indices = @transform_1, window_bounds = array<i64: 16, 36>}, {pipeline_mode = #tpu.pipeline_mode<synchronous>, transform_indices = @transform_2, window_bounds = array<i64: 16, 1>}, {pipeline_mode = #tpu.pipeline_mode<synchronous>, transform_indices = @transform_3, window_bounds = array<i64: 8, 1>}, {transform_indices = @transform_4, window_bounds = array<i64: 1, 8, 256>}]} {
    %c0 = arith.constant 0 : index
    %c0_0 = arith.constant 0 : index
    %0 = vector.load %arg3[%c0, %c0_0] : memref<16x36xbf16, #tpu.memory_space<vmem>>, vector<16x36xbf16>
    %c0_1 = arith.constant 0 : index
    %c0_2 = arith.constant 0 : index
    %c0_3 = arith.constant 0 : index
    %1 = vector.load %arg2[%c0_1, %c0_2, %c0_3] : memref<1x36x256xbf16, #tpu.memory_space<vmem>>, vector<1x36x256xbf16>
    %2 = vector.shape_cast %1 : vector<1x36x256xbf16> to vector<36x256xbf16>
    %cst = arith.constant dense<0.000000e+00> : vector<16x256xf32>
    %3 = tpu.matmul %0, %2, %cst {dimension_numbers = #tpu.dot_dimension_numbers<[1], [0], [0], [1], [0, 0, 1, 1], [], []>} : vector<16x36xbf16>, vector<36x256xbf16>, vector<16x256xf32> -> vector<16x256xf32>
    %c0_4 = arith.constant 0 : index
    %c0_5 = arith.constant 0 : index
    %4 = vector.load %arg4[%c0_4, %c0_5] : memref<16x1xf32, #tpu.memory_space<vmem>>, vector<16x1xf32>
    %5 = vector.broadcast %4 : vector<16x1xf32> to vector<16x256xf32>
    %6 = arith.addf %3, %5 : vector<16x256xf32>
    %7 = vector.extract_strided_slice %6 {offsets = [0, 0], sizes = [8, 256], strides = [1, 1]} : vector<16x256xf32> to vector<8x256xf32>
    %8 = vector.extract_strided_slice %6 {offsets = [8, 0], sizes = [8, 256], strides = [1, 1]} : vector<16x256xf32> to vector<8x256xf32>
    %cst_6 = arith.constant 2.000000e+01 : f32
    %9 = vector.broadcast %cst_6 : f32 to vector<8x256xf32>
    %10 = arith.cmpf ogt, %8, %9 : vector<8x256xf32>
    %cst_7 = arith.constant 2.000000e+01 : f32
    %11 = vector.broadcast %cst_7 : f32 to vector<8x256xf32>
    %12 = arith.minimumf %8, %11 : vector<8x256xf32>
    %13 = math.exp %12 : vector<8x256xf32>
    %14 = math.log1p %13 : vector<8x256xf32>
    %15 = arith.select %10, %8, %14 : vector<8x256xi1>, vector<8x256xf32>
    %c0_8 = arith.constant 0 : index
    %c0_9 = arith.constant 0 : index
    %16 = vector.load %arg5[%c0_8, %c0_9] : memref<8x1xf32, #tpu.memory_space<vmem>>, vector<8x1xf32>
    %cst_10 = arith.constant 0.00999999977 : f32
    %cst_11 = arith.constant 1.000000e+00 : f32
    %17 = vector.broadcast %cst_10 : f32 to vector<8x1xf32>
    %18 = arith.maximumf %17, %16 : vector<8x1xf32>
    %19 = vector.broadcast %cst_11 : f32 to vector<8x1xf32>
    %20 = arith.minimumf %19, %18 : vector<8x1xf32>
    %21 = vector.broadcast %20 : vector<8x1xf32> to vector<8x256xf32>
    %22 = arith.addf %15, %21 : vector<8x256xf32>
    %23 = tpu.reciprocal %22 {approx = true} : vector<8x256xf32> -> vector<8x256xf32>
    %24 = arith.mulf %7, %23 : vector<8x256xf32>
    %c0_12 = arith.constant 0 : index
    %c0_13 = arith.constant 0 : index
    %c0_14 = arith.constant 0 : index
    %25 = vector.load %arg6[%c0_12, %c0_13, %c0_14] : memref<1x8x256xf32, #tpu.memory_space<vmem>>, vector<1x8x256xf32>
    %26 = vector.shape_cast %25 : vector<1x8x256xf32> to vector<8x256xf32>
    %27 = vector.shape_cast %24 : vector<8x256xf32> to vector<1x8x256xf32>
    tpu.vector_store %arg6[%c0_12, %c0_13, %c0_14], %27 {strides = array<i32>} : memref<1x8x256xf32, #tpu.memory_space<vmem>>, vector<1x8x256xf32>,
    return
  }
  func.func @transform_0(%arg0: i32, %arg1: i32) -> (i32, i32, i32) {
    %c0_i32 = arith.constant 0 : i32
    %c0_i32_0 = arith.constant 0 : i32
    return %arg0, %c0_i32, %arg1 : i32, i32, i32
  }
  func.func @transform_1(%arg0: i32, %arg1: i32) -> (i32, i32) {
    %c0_i32 = arith.constant 0 : i32
    %c0_i32_0 = arith.constant 0 : i32
    %c0_i32_1 = arith.constant 0 : i32
    return %c0_i32, %c0_i32_0 : i32, i32
  }
  func.func @transform_2(%arg0: i32, %arg1: i32) -> (i32, i32) {
    %c0_i32 = arith.constant 0 : i32
    %c0_i32_0 = arith.constant 0 : i32
    %c0_i32_1 = arith.constant 0 : i32
    return %c0_i32, %c0_i32_0 : i32, i32
  }
  func.func @transform_3(%arg0: i32, %arg1: i32) -> (i32, i32) {
    %c0_i32 = arith.constant 0 : i32
    %c0_i32_0 = arith.constant 0 : i32
    %c0_i32_1 = arith.constant 0 : i32
    return %c0_i32, %c0_i32_0 : i32, i32
  }
  func.func @transform_4(%arg0: i32, %arg1: i32) -> (i32, i32, i32) {
    %c0_i32 = arith.constant 0 : i32
    %c0_i32_0 = arith.constant 0 : i32
    return %arg0, %c0_i32, %arg1 : i32, i32, i32
  }
}

</mosaic_0001>

<bundles_post_ra>
// kernel: siconv2d_forward.1
= control target key start
LH: loop header
LB: loop body
LE: loop exit
PB: predicated region body
PF: predicated region fallthrough
CT: control target
= control target key end

     0   :  { %s591_s15 = smov 0   ;;  %s593_s16 = smov 0   ;;  %s640_s0 = inlined_call_operand.vmem [shape: bf16[2,36,256], index: 0, kind: input, shape index: {}]   ;;  %s641_s1 = inlined_call_operand.vmem [shape: bf16[16,36], index: 1, kind: input, shape index: {}]   ;;  %s642_s2 = inlined_call_operand.vmem [shape: f32[16,1], index: 2, kind: input, shape index: {}]   ;;  %s643_s3 = inlined_call_operand.vmem [shape: f32[8,1], index: 3, kind: input, shape index: {}]   ;;  %s644_s4 = inlined_call_operand.vmem [shape: f32[2,8,256], index: 4, kind: output, shape index: {}]  }
   0x1   :  { %s595_s17 = smov 0  }
   0x2 LB: > { %s26_s18 = sadd.s32 1, %s559_s16  ;;  %p476_p0 = scmp.ge.s32.totalorder %s563_s17, 1  ;;  %s563_s17 = sphi %s595_s17, %s14_s17   ;;  %s559_s16 = sphi %s593_s16, %s646_s16   ;;  %s555_s15 = sphi %s591_s15, %s645_s15  }
   0x3   : > { %p28_p1 = scmp.ge.s32.totalorder %s26_s18, 2  ;;  %p183_p2 = scmp.lt.s32.totalorder %s563_s17, 3 }
   0x5   : > { %s648_s18 = smov (%p28_p1, %s26_s18), 0  ;;  %p184_p3 = pnand %p476_p0, %p183_p2 }
   0x6   : > { %p218_p4 = scmp.lt.s32.totalorder (!%p184_p3), %s555_s15, 1  ;;  %v565_v0 = vmov (!%p184_p3), 0   ;;  %v246_v1 = vld [vmem:[%s642_s2 + $0x8] sm:$0xff] (!%p184_p3)  ;;  %v245_v2 = vld [vmem:[%s642_s2] sm:$0xff] (!%p184_p3)  ;;  %vm291_vm0 = vcmask (!%p184_p3), 1041408   ;;  %vm287_vm1 = vcmask (!%p184_p3), 293888  }
   0x7   : > { %187 = sbr.rel (%p184_p3) target bundleno = 296 (0x128), region = 36  ;;  %330 = vmatprep.mubr.bf16.mxu0 (!%p184_p3), %v565_v0  ;;  %518 = vset.pattern.permute.xlu0 (!%p184_p3), %v565_v0  ;;  %v369_v3 = vld [vmem:[%s643_s3] sm:$0xff] (!%p184_p3) }
   0x8   : > { %519 = vset.pattern.permute.xlu1 (!%p184_p3), %v565_v0  ;;  %254 = vperm.xlu0 (!%p184_p3), %518, %v246_v1   ;;  %v370_v4 = vmax.f32 (!%p184_p3), %v369_v3, 0.01  ;;  %v528_v14 = vld [vmem:[%s641_s1] sm:$0xff] (!%p184_p3)  }
   0x9   : > { %249 = vperm.xlu1 (!%p184_p3), %519, %v245_v2  }
   0xa   : > { %v371_v5 = vmin.f32 (!%p184_p3), %v370_v4, 1.0 }
   0xc   : > { %374 = vperm.xlu0 (!%p184_p3), %518, %v371_v5  }
   0xe   : > { %s650_s15 = smov (!%p218_p4, %s555_s15), 1 }
   0xf   : > { %s492_s25 = smul.u32 40, %s650_s15  ;;  %s491_s5 = sshll.u32 %s650_s15, 4 }
  0x10   : > { %s235_s8 = scalar_lea.vmem %s644_s4, %s491_s5 }
  0x11   : > { %s225_s28 = scalar_lea.vmem %s640_s0, %s492_s25 }
  0x12   : > { %v520_v6 = vld [vmem:[%s225_s28 + $0x4] ss:$8 sps:$4 sm:$0xff]   ;;  %v522_v7 = vld [vmem:[%s225_s28] ss:$8 sps:$4 sm:$0xff]   ;;  %v523_v8 = vld [vmem:[%s225_s28 + $0x14] ss:$8 sps:$4 sm:$0xff]  }
  0x13   : > { %298 = vmatprep.subr.bf16.mxu0 %v520_v6  ;;  %v244_v9 = vld [vmem:[%s225_s28 + $0x20] sm:$0x33]  ;;  %v525_v10 = vld [vmem:[%s225_s28 + $0x10] ss:$8 sps:$4 sm:$0xff]  }
  0x14   : > { %299 = vmatpush1.bf16.msra.mxu0 %v522_v7  ;;  %v486_v11 = vcombine.high %v244_v9, %v244_v9  ;;  %v485_v12 = vcombine.low %v244_v9, %v244_v9 }
  0x15   : > { %300 = vmatprep.subr.bf16.mxu0 %v523_v8 }
  0x16   : > { %v293_v13 = vsel %vm291_vm0, %v485_v12, 0 }
  0x18   : > { %301 = vmatpush1.bf16.msra.mxu0 %v525_v10 }
  0x19   : > { %487 = vmatprep.subr.msk.bf16.mxu0 %vm291_vm0, %v486_v11 }
  0x1c   : > { %303 = vmatpush1.bf16.msra.mxu0 %v293_v13 }
  0x1f   : > { %488 = vmatmul.mubr.msk.bf16.vlgmr.msra.gmra.mrb[0].mxu0 %vm287_vm1, %v528_v14 }
  0x87   : > { %v255_v17 = vpop.permute.xlu0 %254 }
  0x88   : > { %v250_v49 = vpop.permute.xlu1 %249 }
  0x8b   : > { %v375_v43 = vpop.permute.xlu0 %374 }
  0xf2   : > { %v332_v15 = vpop.f32.mrb[0].mxu0 }
  0xf3   : > { %v334_v16 = vpop.f32.mrb[1].mxu0  ;;  %v333_v50 = vadd.f32 %v332_v15, %v250_v49 }
  0xf4   : > { %v336_v18 = vpop.f32.mrb[2].mxu0  ;;  %v335_v52 = vadd.f32 %v334_v16, %v250_v49 }
  0xf5   : > { %v337_v19 = vadd.f32 %v336_v18, %v255_v17  ;;  %v338_v20 = vpop.f32.mrb[3].mxu0 }
  0xf6   : > { %v339_v21 = vadd.f32 %v338_v20, %v255_v17 }
  0xf7   : > { %v343_v22 = vmin.f32 %v337_v19, 20.0  ;;  %vm341_vm3 = vcmp.gt.f32.partialorder %v337_v19, 20.0 }
  0xf8   : > { %v344_v23 = vmin.f32 %v339_v21, 20.0  ;;  %vm342_vm5 = vcmp.gt.f32.partialorder %v339_v21, 20.0 }
  0xf9   : > { %v345_v24 = vmul.f32 1.442695, %v343_v22 }
  0xfa   : > { %v347_v25 = vmul.f32 1.442695, %v344_v23 }
  0xfb   : > { %529 = vpow2.f32 %v345_v24 }
  0xfc   : > { %531 = vpow2.f32 %v347_v25 }
 0x105   : > { %v530_v26 = vpop.eup %529 }
 0x106   : > { %v532_v27 = vpop.eup %531  ;;  %v349_v28 = vadd.f32 1.0, %v530_v26  ;;  %v352_v30 = vmul.f32 -0.5, %v530_v26  ;;  %v355_v33 = vand.u32 2147483647, %v530_v26 }
 0x107   : > { %v358_v29 = vadd.f32 1.0, %v532_v27  ;;  %v361_v31 = vmul.f32 -0.5, %v532_v27  ;;  %v364_v35 = vand.u32 2147483647, %v532_v27 }
 0x108   : > { %533 = vlog2.f32 %v349_v28  ;;  %v353_v32 = vadd.f32 1.0, %v352_v30  ;;  %vm356_vm2 = vcmp.lt.f32.partialorder %v355_v33, 0.0004427343 }
 0x109   : > { %535 = vlog2.f32 %v358_v29  ;;  %v362_v34 = vadd.f32 1.0, %v361_v31  ;;  %vm365_vm4 = vcmp.lt.f32.partialorder %v364_v35, 0.0004427343 }
 0x10a   : > { %v354_v39 = vmul.f32 %v530_v26, %v353_v32 }
 0x10b   : > { %v363_v41 = vmul.f32 %v532_v27, %v362_v34 }
 0x112   : > { %v534_v36 = vpop.eup %533 }
 0x113   : > { %v536_v37 = vpop.eup %535  ;;  %v351_v38 = vmul.f32 0.6931472, %v534_v36 }
 0x114   : > { %v360_v40 = vmul.f32 0.6931472, %v536_v37 }
 0x115   : > { %v357_v42 = vsel %vm356_vm2, %v354_v39, %v351_v38 }
 0x116   : > { %v367_v44 = vsel %vm341_vm3, %v337_v19, %v357_v42  ;;  %v366_v45 = vsel %vm365_vm4, %v363_v41, %v360_v40 }
 0x117   : > { %v377_v46 = vadd.f32 %v375_v43, %v367_v44  ;;  %v368_v47 = vsel %vm342_vm5, %v339_v21, %v366_v45 }
 0x118   : > { %v378_v48 = vadd.f32 %v375_v43, %v368_v47 }
 0x119   : > { %537 = vrcp.f32 %v377_v46 }
 0x11a   : > { %539 = vrcp.f32 %v378_v48 }
 0x123   : > { %v538_v51 = vpop.eup %537 }
 0x124   : > { %v540_v53 = vpop.eup %539  ;;  %v381_v54 = vmul.f32 %v538_v51, %v333_v50 }
 0x125   : > { %v382_v55 = vmul.f32 %v540_v53, %v335_v52 }
 0x126   : > { %383 = vst [vmem:[%s235_s8] sm:$0xff] %v381_v54 }
 0x127   : > { %384 = vst [vmem:[%s235_s8 + $0x8] sm:$0xff] %v382_v55 }
 0x128 PF: > { %s14_s17 = sadd.s32 1, %s563_s17   ;;  %s645_s15 = smov %s559_s16 }
 0x129   : > { %p11_p5 = scmp.ge.s32.totalorder %s14_s17, 4   ;;  %s646_s16 = smov %s648_s18 }
 0x12b   :  { %13 = sbr.rel (!%p11_p5) target bundleno = 2 (0x2), region = 66 }

</bundles_post_ra>
